<compile_context>
chip_gen: v7x
topology: tpu7x:2x2x1
jax: 0.10.0
libtpu: 0.0.40
codegen_flags: <defaults>
</compile_context>

<pallas_src>
import functools

import jax
import jax.numpy as jnp
from jax.experimental import pallas as pl
from jax.experimental.pallas import tpu as pltpu

_LANE = 128
_SUBLANE = 8


def _round_up(n, m):
    return ((n + m - 1) // m) * m


def _mlp_kernel(x_ref, w1_ref, b1_ref, w2_ref, b2_ref, o_ref):
    # Normalize + untransform affines are pre-folded into (w1, b1) / (w2, b2),
    # so the kernel is pure MXU matmul + EUP tanh with f32 accumulation.
    h = jnp.dot(x_ref[...], w1_ref[...], preferred_element_type=jnp.float32)
    h = jnp.tanh(h + b1_ref[...])
    o_ref[...] = (
        jnp.dot(h, w2_ref[...], preferred_element_type=jnp.float32) + b2_ref[...]
    )


def fold_and_pad_params(params):
    """One-time param preprocess: fold the input normalize and the outcome
    un-standardize into the MLP weights, then pad H/O up to lane-dense 128."""
    lo, hi, w1, b1, w2, b2, mean, std = params
    D, H = w1.shape
    O = w2.shape[1]

    # input_transformer: x_norm = (x - lo) * scale, scale = 1/(hi - lo)
    denom = hi - lo
    denom = jnp.where(jnp.abs(denom) > 1e-12, denom, 1.0)  # guard degenerate bounds
    scale = 1.0 / denom                                     # [1, D]
    w1f = w1 * scale.reshape(D, 1)                          # row-scale W1
    b1f = b1 - (lo * scale) @ w1                            # [1, H]

    # outcome_transformer.untransform: y = y_model * std + mean
    w2f = w2 * std                                          # column-scale W2, [H, O]
    b2f = b2 * std + mean                                   # [1, O]

    Hp = _round_up(H, _LANE)
    Op = _round_up(O, _LANE)
    w1p = jnp.pad(w1f, ((0, 0), (0, Hp - H)))
    b1p = jnp.pad(b1f, ((0, 0), (0, Hp - H)))
    w2p = jnp.pad(w2f, ((0, Hp - H), (0, Op - O)))
    b2p = jnp.pad(b2f, ((0, 0), (0, Op - O)))
    return (w1p, b1p, w2p, b2p), O


def _pick_batch_tile(B):
    """Largest batch tile (multiple of 8 sublanes, <= 512 rows) dividing B while
    keeping >= 2 grid steps so the pipeline overlaps DMA/compute and v7x can
    split batch tiles across its two TensorCores."""
    if B < 2 * _SUBLANE:
        return B
    for tb in (512, 256, 128, 64, 32, 16, 8):
        if tb <= B // 2 and B % tb == 0:
            return tb
    return B  # odd batch: one block covering the whole batch dim


@functools.partial(jax.jit, static_argnames=("out_dim",))
def transformed_model_forward(x, folded, out_dim):
    """x: [B, D] float32 -> y: [B, out_dim] float32."""
    w1p, b1p, w2p, b2p = folded
    B, D = x.shape
    Hp = w1p.shape[1]
    Op = w2p.shape[1]

    # Pad batch up to a sublane multiple so tiles stay (8,128)-friendly.
    Bp = _round_up(B, _SUBLANE)
    if Bp != B:
        x = jnp.pad(x, ((0, Bp - B), (0, 0)))
    tb = _pick_batch_tile(Bp)

    y_pad = pl.pallas_call(
        _mlp_kernel,
        out_shape=jax.ShapeDtypeStruct((Bp, Op), jnp.float32),
        grid=(Bp // tb,),
        in_specs=[
            pl.BlockSpec((tb, D), lambda i: (i, 0)),    # x tile streams over batch
            pl.BlockSpec((D, Hp), lambda i: (0, 0)),    # weights stay VMEM-resident
            pl.BlockSpec((1, Hp), lambda i: (0, 0)),
            pl.BlockSpec((Hp, Op), lambda i: (0, 0)),
            pl.BlockSpec((1, Op), lambda i: (0, 0)),
        ],
        out_specs=pl.BlockSpec((tb, Op), lambda i: (i, 0)),
        compiler_params=pltpu.CompilerParams(
            dimension_semantics=("parallel",),  # v7x: shard batch tiles across 2 TCs
        ),
    )(x, w1p, b1p, w2p, b2p)
    return y_pad[:B, :out_dim]


def make_params(key, D, H, O):
    """Deterministic synthetic parameters (no checkpoint load)."""
    ks = jax.random.split(key, 6)
    lo = jnp.zeros((1, D), jnp.float32) - 1.0
    hi = jnp.ones((1, D), jnp.float32) * 2.0
    w1 = jax.random.normal(ks[0], (D, H), jnp.float32) * 0.1
    b1 = jax.random.normal(ks[1], (1, H), jnp.float32) * 0.01
    w2 = jax.random.normal(ks[2], (H, O), jnp.float32) * 0.1
    b2 = jax.random.normal(ks[3], (1, O), jnp.float32) * 0.01
    mean = jax.random.normal(ks[4], (1, O), jnp.float32)
    std = jnp.abs(jax.random.normal(ks[5], (1, O), jnp.float32)) + 0.5
    return (lo, hi, w1, b1, w2, b2, mean, std)


def reference_forward(x, params):
    """Original (unfolded) TransformedModel math."""
    lo, hi, w1, b1, w2, b2, mean, std = params
    xn = (x - lo) / (hi - lo)
    h = jnp.tanh(xn @ w1 + b1)
    return (h @ w2 + b2) * std + mean


def folded_reference(x, folded, out_dim):
    """Same math / same arrays as the kernel consumes (fold + pad)."""
    w1p, b1p, w2p, b2p = folded
    h = jnp.tanh(x @ w1p + b1p)
    return (h @ w2p + b2p)[:, :out_dim]


if __name__ == "__main__":
    B, D, H, O = 512, 16, 32, 4
    key = jax.random.PRNGKey(0)
    kx, kp = jax.random.split(key)
    x = jax.random.uniform(kx, (B, D), jnp.float32, minval=-1.0, maxval=2.0)
    params = make_params(kp, D, H, O)
    folded, out_dim = fold_and_pad_params(params)

    y = transformed_model_forward(x, folded, out_dim)
    y = jax.block_until_ready(y)
    assert y.shape == (B, O)

    # Check against a pure-JAX reference using the exact folded/padded params.
    y_fold = folded_reference(x, folded, out_dim)
    assert jnp.allclose(y, y_fold, atol=1e-3, rtol=1e-3), float(
        jnp.max(jnp.abs(y - y_fold))
    )

    # Semantic check against the original (unfolded) TransformedModel math; looser
    # tolerance covers default-precision (bf16-pass) MXU rounding of folded weights.
    y_ref = reference_forward(x, params)
    assert jnp.allclose(y, y_ref, atol=3e-2, rtol=3e-2), float(
        jnp.max(jnp.abs(y - y_ref))
    )

    print("KERNEL_OK")
</pallas_src>

<mosaic_0001>
module attributes {stable_mosaic.version = 11 : i64} {
  func.func @_mlp_kernel(%arg0: i32, %arg1: memref<256x16xf32, #tpu.memory_space<vmem>>, %arg2: memref<16x128xf32, #tpu.memory_space<vmem>>, %arg3: memref<1x128xf32, #tpu.memory_space<vmem>>, %arg4: memref<128x128xf32, #tpu.memory_space<vmem>>, %arg5: memref<1x128xf32, #tpu.memory_space<vmem>>, %arg6: memref<256x128xf32, #tpu.memory_space<vmem>>) attributes {dimension_semantics = [#tpu.dimension_semantics<parallel>], iteration_bounds = array<i64: 2>, scalar_prefetch = 0 : i64, scratch_operands = 0 : i64, tpu.core_type = #tpu.core_type<tc>, window_params = [{transform_indices = @transform_0, window_bounds = array<i64: 256, 16>}, {pipeline_mode = #tpu.pipeline_mode<synchronous>, transform_indices = @transform_1, window_bounds = array<i64: 16, 128>}, {pipeline_mode = #tpu.pipeline_mode<synchronous>, transform_indices = @transform_2, window_bounds = array<i64: 1, 128>}, {pipeline_mode = #tpu.pipeline_mode<synchronous>, transform_indices = @transform_3, window_bounds = array<i64: 128, 128>}, {pipeline_mode = #tpu.pipeline_mode<synchronous>, transform_indices = @transform_4, window_bounds = array<i64: 1, 128>}, {transform_indices = @transform_5, window_bounds = array<i64: 256, 128>}]} {
    %c0 = arith.constant 0 : index
    %c0_0 = arith.constant 0 : index
    %0 = vector.load %arg1[%c0, %c0_0] : memref<256x16xf32, #tpu.memory_space<vmem>>, vector<256x16xf32>
    %c0_1 = arith.constant 0 : index
    %c0_2 = arith.constant 0 : index
    %1 = vector.load %arg2[%c0_1, %c0_2] : memref<16x128xf32, #tpu.memory_space<vmem>>, vector<16x128xf32>
    %cst = arith.constant dense<0.000000e+00> : vector<256x128xf32>
    %2 = tpu.matmul %0, %1, %cst {dimension_numbers = #tpu.dot_dimension_numbers<[1], [0], [0], [1], [0, 0, 1, 1], [], []>} : vector<256x16xf32>, vector<16x128xf32>, vector<256x128xf32> -> vector<256x128xf32>
    %c0_3 = arith.constant 0 : index
    %c0_4 = arith.constant 0 : index
    %3 = vector.load %arg3[%c0_3, %c0_4] : memref<1x128xf32, #tpu.memory_space<vmem>>, vector<1x128xf32>
    %4 = vector.broadcast %3 : vector<1x128xf32> to vector<256x128xf32>
    %5 = arith.addf %2, %4 : vector<256x128xf32>
    %6 = math.tanh %5 : vector<256x128xf32>
    %c0_5 = arith.constant 0 : index
    %c0_6 = arith.constant 0 : index
    %7 = vector.load %arg4[%c0_5, %c0_6] : memref<128x128xf32, #tpu.memory_space<vmem>>, vector<128x128xf32>
    %cst_7 = arith.constant dense<0.000000e+00> : vector<256x128xf32>
    %8 = tpu.matmul %6, %7, %cst_7 {dimension_numbers = #tpu.dot_dimension_numbers<[1], [0], [0], [1], [0, 0, 1, 1], [], []>} : vector<256x128xf32>, vector<128x128xf32>, vector<256x128xf32> -> vector<256x128xf32>
    %c0_8 = arith.constant 0 : index
    %c0_9 = arith.constant 0 : index
    %9 = vector.load %arg5[%c0_8, %c0_9] : memref<1x128xf32, #tpu.memory_space<vmem>>, vector<1x128xf32>
    %10 = vector.broadcast %9 : vector<1x128xf32> to vector<256x128xf32>
    %11 = arith.addf %8, %10 : vector<256x128xf32>
    %c0_10 = arith.constant 0 : index
    %c0_11 = arith.constant 0 : index
    %12 = vector.load %arg6[%c0_10, %c0_11] : memref<256x128xf32, #tpu.memory_space<vmem>>, vector<256x128xf32>
    tpu.vector_store %arg6[%c0_10, %c0_11], %11 {strides = array<i32>} : memref<256x128xf32, #tpu.memory_space<vmem>>, vector<256x128xf32>,
    return
  }
  func.func @transform_0(%arg0: i32) -> (i32, i32) {
    %c0_i32 = arith.constant 0 : i32
    %c0_i32_0 = arith.constant 0 : i32
    return %arg0, %c0_i32 : i32, i32
  }
  func.func @transform_1(%arg0: i32) -> (i32, i32) {
    %c0_i32 = arith.constant 0 : i32
    %c0_i32_0 = arith.constant 0 : i32
    %c0_i32_1 = arith.constant 0 : i32
    return %c0_i32, %c0_i32_0 : i32, i32
  }
  func.func @transform_2(%arg0: i32) -> (i32, i32) {
    %c0_i32 = arith.constant 0 : i32
    %c0_i32_0 = arith.constant 0 : i32
    %c0_i32_1 = arith.constant 0 : i32
    return %c0_i32, %c0_i32_0 : i32, i32
  }
  func.func @transform_3(%arg0: i32) -> (i32, i32) {
    %c0_i32 = arith.constant 0 : i32
    %c0_i32_0 = arith.constant 0 : i32
    %c0_i32_1 = arith.constant 0 : i32
    return %c0_i32, %c0_i32_0 : i32, i32
  }
  func.func @transform_4(%arg0: i32) -> (i32, i32) {
    %c0_i32 = arith.constant 0 : i32
    %c0_i32_0 = arith.constant 0 : i32
    %c0_i32_1 = arith.constant 0 : i32
    return %c0_i32, %c0_i32_0 : i32, i32
  }
  func.func @transform_5(%arg0: i32) -> (i32, i32) {
    %c0_i32 = arith.constant 0 : i32
    %c0_i32_0 = arith.constant 0 : i32
    return %arg0, %c0_i32 : i32, i32
  }
}

</mosaic_0001>

<bundles_post_ra>
// kernel: transformed_model_forward.1
= control target key start
LH: loop header
LB: loop body
LE: loop exit
PB: predicated region body
PF: predicated region fallthrough
CT: control target
= control target key end

     0   :  { %s1380_s18 = smov 0   ;;  %s1632_s0 = inlined_call_operand.vmem [shape: f32[512,16], index: 0, kind: input, shape index: {}]   ;;  %s1633_s1 = inlined_call_operand.vmem [shape: f32[16,128], index: 1, kind: input, shape index: {}]   ;;  %s1634_s2 = inlined_call_operand.vmem [shape: f32[1,128], index: 2, kind: input, shape index: {}]   ;;  %s1635_s3 = inlined_call_operand.vmem [shape: f32[128,128], index: 3, kind: input, shape index: {}]   ;;  %s1636_s4 = inlined_call_operand.vmem [shape: f32[1,128], index: 4, kind: input, shape index: {}]   ;;  %s1637_s5 = inlined_call_operand.vmem [shape: f32[512,128], index: 5, kind: output, shape index: {}]  }
   0x1 LB: > { %s959_s19 = sadd.s32 4294967295, %s1348_s18   ;;  %p963_p0 = scmp.ge.s32.totalorder %s1348_s18, 1  ;;  %s1348_s18 = sphi %s1380_s18, %s15_s18  }
   0x2   : > { %p188_p1 = scmp.lt.s32.totalorder %s1348_s18, 3 }
   0x4   : > { %p189_p2 = pnand %p963_p0, %p188_p1 }
   0x5   : > { %v260_v0 = vld [vmem:[%s1633_s1] sm:$0xff] (!%p189_p2)  ;;  %v261_v1 = vld [vmem:[%s1633_s1 + $0x8] sm:$0xff] (!%p189_p2)  ;;  %s964_s24 = sshll.u32 (!%p189_p2), %s959_s19, 5  ;;  %v625_v5 = vld [vmem:[%s1635_s3 + $0x10] sm:$0xff] (!%p189_p2)  ;;  %vm269_vm0 = vcmask (!%p189_p2), 130048  }
   0x6   : > { %192 = sbr.rel (%p189_p2) target bundleno = 521 (0x209), region = 40  ;;  %v623_v2 = vld [vmem:[%s1635_s3] sm:$0xff] (!%p189_p2)  ;;  %v1218_v3 = vpack.c.bf16 (!%p189_p2), %v261_v1, %v260_v0  ;;  %p217_p3 = scmp.lt.s32.totalorder (!%p189_p2), %s964_s24, 63  ;;  %v624_v4 = vld [vmem:[%s1635_s3 + $0x8] sm:$0xff] (!%p189_p2)  ;;  %v626_v6 = vld [vmem:[%s1635_s3 + $0x18] sm:$0xff] (!%p189_p2) }
   0x7   : > { %v1222_v7 = vpack.c.bf16 (!%p189_p2), %v624_v4, %v623_v2  ;;  %v1226_v8 = vpack.c.bf16 (!%p189_p2), %v626_v6, %v625_v5  ;;  %v627_v9 = vld [vmem:[%s1635_s3 + $0x20] sm:$0xff] (!%p189_p2)  ;;  %v628_v10 = vld [vmem:[%s1635_s3 + $0x28] sm:$0xff] (!%p189_p2)  ;;  %v629_v16 = vld [vmem:[%s1635_s3 + $0x30] sm:$0xff] (!%p189_p2) }
   0x8   : > { %1219 = vmatprep.subr.bf16.mxu0 (!%p189_p2), %v1218_v3  ;;  %v1230_v14 = vpack.c.bf16 (!%p189_p2), %v628_v10, %v627_v9  ;;  %v630_v17 = vld [vmem:[%s1635_s3 + $0x38] sm:$0xff] (!%p189_p2)  ;;  %v631_v47 = vld [vmem:[%s1635_s3 + $0x40] sm:$0xff] (!%p189_p2)  ;;  %v632_v48 = vld [vmem:[%s1635_s3 + $0x48] sm:$0xff] (!%p189_p2) }
   0x9   : > { %1221 = vmatpush3.bf16.msra.mxu0 (!%p189_p2), %v1218_v3  ;;  %1254 = vmatprep.subr.bf16.mxu1 (!%p189_p2), %v1222_v7  ;;  %v1234_v19 = vpack.c.bf16 (!%p189_p2), %v630_v17, %v629_v16  ;;  %v1238_v49 = vpack.c.bf16 (!%p189_p2), %v632_v48, %v631_v47  ;;  %v633_v50 = vld [vmem:[%s1635_s3 + $0x50] sm:$0xff] (!%p189_p2)  ;;  %v634_v51 = vld [vmem:[%s1635_s3 + $0x58] sm:$0xff] (!%p189_p2)  ;;  %v635_v53 = vld [vmem:[%s1635_s3 + $0x60] sm:$0xff] (!%p189_p2) }
   0xa   : > { %1223 = vmatprep.subr.bf16.mxu0 (!%p189_p2), %v1222_v7  ;;  %1262 = vmatpush3.bf16.msra.mxu1 (!%p189_p2), %v1222_v7  ;;  %v1242_v52 = vpack.c.bf16 (!%p189_p2), %v634_v51, %v633_v50  ;;  %v636_v54 = vld [vmem:[%s1635_s3 + $0x68] sm:$0xff] (!%p189_p2)  ;;  %v637_v56 = vld [vmem:[%s1635_s3 + $0x70] sm:$0xff] (!%p189_p2)  ;;  %v638_v57 = vld [vmem:[%s1635_s3 + $0x78] sm:$0xff] (!%p189_p2) }
   0xb   : > { %1255 = vmatprep.subr.bf16.mxu1 (!%p189_p2), %v1226_v8  ;;  %v1246_v55 = vpack.c.bf16 (!%p189_p2), %v636_v54, %v635_v53  ;;  %v1250_v58 = vpack.c.bf16 (!%p189_p2), %v638_v57, %v637_v56  ;;  %v1519_v59 = vld [vmem:[%s1634_s2] ss:$0 sm:$0xff] (!%p189_p2) }
   0xd   : > { %s1639_s24 = smov (!%p217_p3, %s964_s24), 63 }
   0xe   : > { %s965_s8 = sshll.u32 %s1639_s24, 3  ;;  %1263 = vmatpush3.bf16.msra.mxu1 %v1226_v8 }
   0xf   : > { %s1414_s11 = scalar_lea.vmem %s1632_s0, %s965_s8  ;;  %1256 = vmatprep.subr.bf16.mxu1 %v1230_v14  ;;  %s1563_s21 = scalar_lea.vmem %s1637_s5, %s965_s8 }
  0x10   : > { %v228_v11 = vld [vmem:[%s1414_s11] sm:$0xff]  ;;  %v229_v12 = vld [vmem:[%s1414_s11 + $0x8] sm:$0xff]  ;;  %v230_v13 = vld [vmem:[%s1414_s11 + $0x10] sm:$0xff] }
  0x11   : > { %1090 = vmatprep.mubr.msk.f32.mxu0 %vm269_vm0, %v228_v11  ;;  %v231_v15 = vld [vmem:[%s1414_s11 + $0x18] sm:$0xff]  ;;  %v232_v18 = vld [vmem:[%s1414_s11 + $0x20] sm:$0xff]  ;;  %v233_v20 = vld [vmem:[%s1414_s11 + $0x28] sm:$0xff] }
  0x12   : > { %1091 = vmatmul.mubr.msk.f32.vlgmr.msra.gmra.mrb[0].mxu0 %vm269_vm0, %v229_v12  ;;  %1264 = vmatpush3.bf16.msra.mxu1 %v1230_v14  ;;  %v234_v21 = vld [vmem:[%s1414_s11 + $0x30] sm:$0xff]  ;;  %v235_v22 = vld [vmem:[%s1414_s11 + $0x38] sm:$0xff]  ;;  %v236_v23 = vld [vmem:[%s1414_s11 + $0x40] sm:$0xff] }
  0x13   : > { %1093 = vmatprep.mubr.msk.f32.mxu0 %vm269_vm0, %v230_v13  ;;  %1225 = vmatpush3.bf16.msra.mxu0 %v1222_v7  ;;  %v237_v24 = vld [vmem:[%s1414_s11 + $0x48] sm:$0xff]  ;;  %v238_v25 = vld [vmem:[%s1414_s11 + $0x50] sm:$0xff]  ;;  %v239_v26 = vld [vmem:[%s1414_s11 + $0x58] sm:$0xff] }
  0x14   : > { %1227 = vmatprep.subr.bf16.mxu0 %v1226_v8  ;;  %1257 = vmatprep.subr.bf16.mxu1 %v1234_v19  ;;  %v240_v27 = vld [vmem:[%s1414_s11 + $0x60] sm:$0xff]  ;;  %v241_v28 = vld [vmem:[%s1414_s11 + $0x68] sm:$0xff]  ;;  %v242_v29 = vld [vmem:[%s1414_s11 + $0x70] sm:$0xff] }
  0x15   : > { %v243_v30 = vld [vmem:[%s1414_s11 + $0x78] sm:$0xff]  ;;  %v244_v31 = vld [vmem:[%s1414_s11 + $0x80] sm:$0xff]  ;;  %v245_v32 = vld [vmem:[%s1414_s11 + $0x88] sm:$0xff] }
  0x16   : > { %1094 = vmatmul.mubr.msk.f32.gmra.mrb[2].mxu0 %vm269_vm0, %v231_v15  ;;  %1265 = vmatpush3.bf16.msra.mxu1 %v1234_v19  ;;  %v246_v33 = vld [vmem:[%s1414_s11 + $0x90] sm:$0xff]  ;;  %v247_v34 = vld [vmem:[%s1414_s11 + $0x98] sm:$0xff]  ;;  %v248_v35 = vld [vmem:[%s1414_s11 + $0xa0] sm:$0xff] }
  0x17   : > { %1096 = vmatprep.mubr.msk.f32.mxu0 %vm269_vm0, %v232_v18  ;;  %1229 = vmatpush3.bf16.msra.mxu0 %v1226_v8  ;;  %v249_v36 = vld [vmem:[%s1414_s11 + $0xa8] sm:$0xff]  ;;  %v250_v37 = vld [vmem:[%s1414_s11 + $0xb0] sm:$0xff]  ;;  %v251_v38 = vld [vmem:[%s1414_s11 + $0xb8] sm:$0xff] }
  0x18   : > { %1231 = vmatprep.subr.bf16.mxu0 %v1230_v14  ;;  %v252_v39 = vld [vmem:[%s1414_s11 + $0xc0] sm:$0xff]  ;;  %v253_v40 = vld [vmem:[%s1414_s11 + $0xc8] sm:$0xff]  ;;  %v254_v41 = vld [vmem:[%s1414_s11 + $0xd0] sm:$0xff]  ;;  %1258 = vmatprep.subr.bf16.mxu1 %v1238_v49 }
  0x19   : > { %v255_v42 = vld [vmem:[%s1414_s11 + $0xd8] sm:$0xff]  ;;  %v256_v43 = vld [vmem:[%s1414_s11 + $0xe0] sm:$0xff]  ;;  %v257_v44 = vld [vmem:[%s1414_s11 + $0xe8] sm:$0xff] }
  0x1a   : > { %1097 = vmatmul.mubr.msk.f32.gmra.mrb[4].mxu0 %vm269_vm0, %v233_v20  ;;  %v258_v45 = vld [vmem:[%s1414_s11 + $0xf0] sm:$0xff]  ;;  %v259_v46 = vld [vmem:[%s1414_s11 + $0xf8] sm:$0xff]  ;;  %1266 = vmatpush3.bf16.msra.mxu1 %v1238_v49 }
  0x1b   : > { %1099 = vmatprep.mubr.msk.f32.mxu0 %vm269_vm0, %v234_v21  ;;  %1233 = vmatpush3.bf16.msra.mxu0 %v1230_v14 }
  0x1c   : > { %1235 = vmatprep.subr.bf16.mxu0 %v1234_v19  ;;  %1259 = vmatprep.subr.bf16.mxu1 %v1242_v52 }
  0x1e   : > { %1100 = vmatmul.mubr.msk.f32.gmra.mrb[6].mxu0 %vm269_vm0, %v235_v22  ;;  %1267 = vmatpush3.bf16.msra.mxu1 %v1242_v52 }
  0x1f   : > { %1102 = vmatprep.mubr.msk.f32.mxu0 %vm269_vm0, %v236_v23  ;;  %1237 = vmatpush3.bf16.msra.mxu0 %v1234_v19 }
  0x20   : > { %1239 = vmatprep.subr.bf16.mxu0 %v1238_v49  ;;  %1260 = vmatprep.subr.bf16.mxu1 %v1246_v55 }
  0x22   : > { %1103 = vmatmul.mubr.msk.f32.gmra.mrb[8].mxu0 %vm269_vm0, %v237_v24  ;;  %1268 = vmatpush3.bf16.msra.mxu1 %v1246_v55 }
  0x23   : > { %1105 = vmatprep.mubr.msk.f32.mxu0 %vm269_vm0, %v238_v25  ;;  %1241 = vmatpush3.bf16.msra.mxu0 %v1238_v49 }
  0x24   : > { %1243 = vmatprep.subr.bf16.mxu0 %v1242_v52  ;;  %1261 = vmatprep.subr.bf16.mxu1 %v1250_v58 }
  0x26   : > { %1106 = vmatmul.mubr.msk.f32.gmra.mrb[10].mxu0 %vm269_vm0, %v239_v26  ;;  %1269 = vmatpush3.bf16.msra.mxu1 %v1250_v58 }
  0x27   : > { %1108 = vmatprep.mubr.msk.f32.mxu0 %vm269_vm0, %v240_v27  ;;  %1245 = vmatpush3.bf16.msra.mxu0 %v1242_v52 }
  0x28   : > { %1247 = vmatprep.subr.bf16.mxu0 %v1246_v55 }
  0x2a   : > { %1109 = vmatmul.mubr.msk.f32.gmra.mrb[12].mxu0 %vm269_vm0, %v241_v28 }
  0x2b   : > { %1111 = vmatprep.mubr.msk.f32.mxu0 %vm269_vm0, %v242_v29  ;;  %1249 = vmatpush3.bf16.msra.mxu0 %v1246_v55 }
  0x2c   : > { %1251 = vmatprep.subr.bf16.mxu0 %v1250_v58 }
  0x2e   : > { %1112 = vmatmul.mubr.msk.f32.gmra.mrb[14].mxu0 %vm269_vm0, %v243_v30 }
  0x2f   : > { %1114 = vmatprep.mubr.msk.f32.mxu0 %vm269_vm0, %v244_v31  ;;  %1253 = vmatpush3.bf16.msra.mxu0 %v1250_v58 }
  0x32   : > { %1115 = vmatmul.mubr.msk.f32.gmra.mrb[16].mxu0 %vm269_vm0, %v245_v32 }
  0x33   : > { %1117 = vmatprep.mubr.msk.f32.mxu0 %vm269_vm0, %v246_v33 }
  0x36   : > { %1118 = vmatmul.mubr.msk.f32.gmra.mrb[18].mxu0 %vm269_vm0, %v247_v34 }
  0x37   : > { %1120 = vmatprep.mubr.msk.f32.mxu0 %vm269_vm0, %v248_v35 }
  0x3a   : > { %1121 = vmatmul.mubr.msk.f32.gmra.mrb[20].mxu0 %vm269_vm0, %v249_v36 }
  0x3b   : > { %1123 = vmatprep.mubr.msk.f32.mxu0 %vm269_vm0, %v250_v37 }
  0x3e   : > { %1124 = vmatmul.mubr.msk.f32.gmra.mrb[22].mxu0 %vm269_vm0, %v251_v38 }
  0x3f   : > { %1126 = vmatprep.mubr.msk.f32.mxu0 %vm269_vm0, %v252_v39 }
  0x42   : > { %1127 = vmatmul.mubr.msk.f32.gmra.mrb[24].mxu0 %vm269_vm0, %v253_v40 }
  0x43   : > { %1129 = vmatprep.mubr.msk.f32.mxu0 %vm269_vm0, %v254_v41 }
  0x46   : > { %1130 = vmatmul.mubr.msk.f32.gmra.mrb[26].mxu0 %vm269_vm0, %v255_v42 }
  0x47   : > { %1132 = vmatprep.mubr.msk.f32.mxu0 %vm269_vm0, %v256_v43 }
  0x4a   : > { %1133 = vmatmul.mubr.msk.f32.gmra.mrb[28].mxu0 %vm269_vm0, %v257_v44 }
  0x4b   : > { %1135 = vmatprep.mubr.msk.f32.mxu0 %vm269_vm0, %v258_v45 }
  0x4e   : > { %1136 = vmatmul.mubr.msk.f32.gmra.mrb[30].mxu0 %vm269_vm0, %v259_v46 }
  0xe5   : > { %v1092_v60 = vpop.f32.mrb[0].mxu0 }
  0xe6   : > { %v438_v61 = vadd.f32 %v1092_v60, %v1519_v59  ;;  %v432_v62 = vpop.f32.mrb[1].mxu0 }
  0xe7   : > { %v433_v63 = vadd.f32 %v1519_v59, %v432_v62 }
  0xe9   : > { %1278 = vtanh.f32 %v433_v63  ;;  %v1095_v0 = vpop.f32.mrb[2].mxu0 }
  0xea   : > { %1280 = vtanh.f32 %v438_v61  ;;  %v448_v1 = vadd.f32 %v1095_v0, %v1519_v59  ;;  %v442_v2 = vpop.f32.mrb[3].mxu0 }
  0xeb   : > { %v443_v3 = vadd.f32 %v1519_v59, %v442_v2 }
  0xed   : > { %1282 = vtanh.f32 %v443_v3  ;;  %v1098_v4 = vpop.f32.mrb[4].mxu0 }
  0xee   : > { %1284 = vtanh.f32 %v448_v1  ;;  %v458_v5 = vadd.f32 %v1098_v4, %v1519_v59  ;;  %v452_v6 = vpop.f32.mrb[5].mxu0 }
  0xef   : > { %v453_v7 = vadd.f32 %v1519_v59, %v452_v6 }
  0xf1   : > { %1286 = vtanh.f32 %v453_v7  ;;  %v1101_v8 = vpop.f32.mrb[6].mxu0 }
  0xf2   : > { %1288 = vtanh.f32 %v458_v5  ;;  %v468_v9 = vadd.f32 %v1101_v8, %v1519_v59  ;;  %v462_v10 = vpop.f32.mrb[7].mxu0 }
  0xf3   : > { %v1279_v11 = vpop.eup %1278  ;;  %v463_v12 = vadd.f32 %v1519_v59, %v462_v10 }
  0xf4   : > { %v1281_v13 = vpop.eup %1280  ;;  %1170 = vmatprep.mubr.f32.mxu0 %v1279_v11 }
  0xf5   : > { %1290 = vtanh.f32 %v463_v12  ;;  %v1104_v14 = vpop.f32.mrb[8].mxu0  ;;  %1171 = vmatmul.mubr.f32.vlgmr.msra.gmra.mrb[32].mxu0 %v1281_v13 }
  0xf6   : > { %1292 = vtanh.f32 %v468_v9  ;;  %v478_v15 = vadd.f32 %v1104_v14, %v1519_v59  ;;  %v472_v16 = vpop.f32.mrb[9].mxu0 }
  0xf7   : > { %v1283_v17 = vpop.eup %1282  ;;  %v473_v18 = vadd.f32 %v1519_v59, %v472_v16 }
  0xf8   : > { %v1285_v19 = vpop.eup %1284  ;;  %1173 = vmatprep.mubr.f32.mxu0 %v1283_v17 }
  0xf9   : > { %1294 = vtanh.f32 %v473_v18  ;;  %v1107_v20 = vpop.f32.mrb[10].mxu0  ;;  %1174 = vmatmul.mubr.f32.gmra.mrb[34].mxu0 %v1285_v19 }
  0xfa   : > { %1296 = vtanh.f32 %v478_v15  ;;  %v488_v21 = vadd.f32 %v1107_v20, %v1519_v59  ;;  %v482_v22 = vpop.f32.mrb[11].mxu0 }
  0xfb   : > { %v1287_v23 = vpop.eup %1286  ;;  %v483_v24 = vadd.f32 %v1519_v59, %v482_v22 }
  0xfc   : > { %v1289_v25 = vpop.eup %1288  ;;  %1176 = vmatprep.mubr.f32.mxu0 %v1287_v23 }
  0xfd   : > { %1298 = vtanh.f32 %v483_v24  ;;  %v1110_v26 = vpop.f32.mrb[12].mxu0  ;;  %1177 = vmatmul.mubr.f32.gmra.mrb[36].mxu0 %v1289_v25 }
  0xfe   : > { %1300 = vtanh.f32 %v488_v21  ;;  %v498_v27 = vadd.f32 %v1110_v26, %v1519_v59  ;;  %v492_v28 = vpop.f32.mrb[13].mxu0 }
  0xff   : > { %v1291_v29 = vpop.eup %1290  ;;  %v493_v30 = vadd.f32 %v1519_v59, %v492_v28 }
 0x100   : > { %v1293_v31 = vpop.eup %1292  ;;  %1179 = vmatprep.mubr.f32.mxu1 %v1291_v29 }
 0x101   : > { %1302 = vtanh.f32 %v493_v30  ;;  %v1113_v32 = vpop.f32.mrb[14].mxu0  ;;  %1180 = vmatmul.mubr.f32.vlgmr.msra.gmra.mrb[0].mxu1 %v1293_v31 }
 0x102   : > { %1304 = vtanh.f32 %v498_v27  ;;  %v508_v33 = vadd.f32 %v1113_v32, %v1519_v59  ;;  %v502_v34 = vpop.f32.mrb[15].mxu0 }
 0x103   : > { %v1295_v35 = vpop.eup %1294  ;;  %v503_v36 = vadd.f32 %v1519_v59, %v502_v34 }
 0x104   : > { %v1297_v37 = vpop.eup %1296  ;;  %1182 = vmatprep.mubr.f32.mxu1 %v1295_v35 }
 0x105   : > { %1306 = vtanh.f32 %v503_v36  ;;  %v1116_v38 = vpop.f32.mrb[16].mxu0  ;;  %1183 = vmatmul.mubr.f32.gmra.mrb[2].mxu1 %v1297_v37 }
 0x106   : > { %1308 = vtanh.f32 %v508_v33  ;;  %v518_v39 = vadd.f32 %v1116_v38, %v1519_v59  ;;  %v512_v40 = vpop.f32.mrb[17].mxu0 }
 0x107   : > { %v1299_v41 = vpop.eup %1298  ;;  %v513_v42 = vadd.f32 %v1519_v59, %v512_v40 }
 0x108   : > { %v1301_v43 = vpop.eup %1300  ;;  %1185 = vmatprep.mubr.f32.mxu1 %v1299_v41 }
 0x109   : > { %1310 = vtanh.f32 %v513_v42  ;;  %v1119_v44 = vpop.f32.mrb[18].mxu0  ;;  %1186 = vmatmul.mubr.f32.gmra.mrb[4].mxu1 %v1301_v43 }
 0x10a   : > { %1312 = vtanh.f32 %v518_v39  ;;  %v528_v45 = vadd.f32 %v1119_v44, %v1519_v59  ;;  %v522_v46 = vpop.f32.mrb[19].mxu0 }
 0x10b   : > { %v1303_v47 = vpop.eup %1302  ;;  %v523_v48 = vadd.f32 %v1519_v59, %v522_v46 }
 0x10c   : > { %v1305_v49 = vpop.eup %1304  ;;  %1188 = vmatprep.mubr.f32.mxu1 %v1303_v47 }
 0x10d   : > { %1314 = vtanh.f32 %v523_v48  ;;  %v1122_v50 = vpop.f32.mrb[20].mxu0  ;;  %1189 = vmatmul.mubr.f32.gmra.mrb[6].mxu1 %v1305_v49 }
 0x10e   : > { %1316 = vtanh.f32 %v528_v45  ;;  %v538_v51 = vadd.f32 %v1122_v50, %v1519_v59  ;;  %v532_v52 = vpop.f32.mrb[21].mxu0 }
 0x10f   : > { %v1307_v53 = vpop.eup %1306  ;;  %v533_v54 = vadd.f32 %v1519_v59, %v532_v52 }
 0x110   : > { %v1309_v55 = vpop.eup %1308  ;;  %1191 = vmatprep.mubr.f32.mxu1 %v1307_v53 }
 0x111   : > { %1318 = vtanh.f32 %v533_v54  ;;  %v1125_v56 = vpop.f32.mrb[22].mxu0  ;;  %1192 = vmatmul.mubr.f32.gmra.mrb[8].mxu1 %v1309_v55 }
 0x112   : > { %1320 = vtanh.f32 %v538_v51  ;;  %v548_v57 = vadd.f32 %v1125_v56, %v1519_v59  ;;  %v542_v58 = vpop.f32.mrb[23].mxu0 }
 0x113   : > { %v1311_v60 = vpop.eup %1310  ;;  %v543_v61 = vadd.f32 %v1519_v59, %v542_v58 }
 0x114   : > { %v1313_v62 = vpop.eup %1312  ;;  %1194 = vmatprep.mubr.f32.mxu1 %v1311_v60 }
 0x115   : > { %1322 = vtanh.f32 %v543_v61  ;;  %v1128_v63 = vpop.f32.mrb[24].mxu0  ;;  %1195 = vmatmul.mubr.f32.gmra.mrb[10].mxu1 %v1313_v62 }
 0x116   : > { %1324 = vtanh.f32 %v548_v57  ;;  %v558_v0 = vadd.f32 %v1128_v63, %v1519_v59  ;;  %v552_v1 = vpop.f32.mrb[25].mxu0 }
 0x117   : > { %v1315_v2 = vpop.eup %1314  ;;  %v553_v3 = vadd.f32 %v1519_v59, %v552_v1 }
 0x118   : > { %v1317_v4 = vpop.eup %1316  ;;  %1197 = vmatprep.mubr.f32.mxu1 %v1315_v2 }
 0x119   : > { %1326 = vtanh.f32 %v553_v3  ;;  %v1131_v5 = vpop.f32.mrb[26].mxu0  ;;  %1198 = vmatmul.mubr.f32.gmra.mrb[12].mxu1 %v1317_v4 }
 0x11a   : > { %1328 = vtanh.f32 %v558_v0  ;;  %v568_v6 = vadd.f32 %v1131_v5, %v1519_v59  ;;  %v562_v7 = vpop.f32.mrb[27].mxu0 }
 0x11b   : > { %v1319_v8 = vpop.eup %1318  ;;  %v563_v9 = vadd.f32 %v1519_v59, %v562_v7 }
 0x11c   : > { %v1321_v10 = vpop.eup %1320  ;;  %1200 = vmatprep.mubr.f32.mxu1 %v1319_v8 }
 0x11d   : > { %1330 = vtanh.f32 %v563_v9  ;;  %v1134_v11 = vpop.f32.mrb[28].mxu0  ;;  %1201 = vmatmul.mubr.f32.gmra.mrb[14].mxu1 %v1321_v10 }
 0x11e   : > { %1332 = vtanh.f32 %v568_v6  ;;  %v578_v12 = vadd.f32 %v1134_v11, %v1519_v59  ;;  %v572_v13 = vpop.f32.mrb[29].mxu0 }
 0x11f   : > { %v1323_v14 = vpop.eup %1322  ;;  %v573_v15 = vadd.f32 %v1519_v59, %v572_v13 }
 0x120   : > { %v1325_v16 = vpop.eup %1324  ;;  %1203 = vmatprep.mubr.f32.mxu1 %v1323_v14 }
 0x121   : > { %1334 = vtanh.f32 %v573_v15  ;;  %v1137_v17 = vpop.f32.mrb[30].mxu0  ;;  %1204 = vmatmul.mubr.f32.gmra.mrb[16].mxu1 %v1325_v16 }
 0x122   : > { %1336 = vtanh.f32 %v578_v12  ;;  %v588_v18 = vadd.f32 %v1137_v17, %v1519_v59  ;;  %v582_v19 = vpop.f32.mrb[31].mxu0 }
 0x123   : > { %v1327_v20 = vpop.eup %1326  ;;  %v583_v21 = vadd.f32 %v1519_v59, %v582_v19  ;;  %v1556_v59 = vld [vmem:[%s1636_s4] ss:$0 sm:$0xff] }
 0x124   : > { %v1329_v22 = vpop.eup %1328  ;;  %1206 = vmatprep.mubr.f32.mxu1 %v1327_v20 }
 0x125   : > { %1338 = vtanh.f32 %v583_v21  ;;  %1207 = vmatmul.mubr.f32.gmra.mrb[18].mxu1 %v1329_v22 }
 0x126   : > { %1340 = vtanh.f32 %v588_v18 }
 0x127   : > { %v1331_v23 = vpop.eup %1330 }
 0x128   : > { %v1333_v24 = vpop.eup %1332  ;;  %1209 = vmatprep.mubr.f32.mxu1 %v1331_v23 }
 0x129   : > { %1210 = vmatmul.mubr.f32.gmra.mrb[20].mxu1 %v1333_v24 }
 0x12b   : > { %v1335_v25 = vpop.eup %1334 }
 0x12c   : > { %v1337_v26 = vpop.eup %1336  ;;  %1212 = vmatprep.mubr.f32.mxu1 %v1335_v25 }
 0x12d   : > { %1213 = vmatmul.mubr.f32.gmra.mrb[22].mxu1 %v1337_v26 }
 0x12f   : > { %v1339_v27 = vpop.eup %1338 }
 0x130   : > { %v1341_v28 = vpop.eup %1340  ;;  %1215 = vmatprep.mubr.f32.mxu1 %v1339_v27 }
 0x131   : > { %1216 = vmatmul.mubr.f32.gmra.mrb[24].mxu1 %v1341_v28 }
 0x1c8   : > { %v1172_v29 = vpop.f32.mrb[32].mxu0 }
 0x1c9   : > { %v718_v30 = vadd.f32 %v1172_v29, %v1556_v59  ;;  %v712_v31 = vpop.f32.mrb[33].mxu0 }
 0x1ca   : > { %v713_v32 = vadd.f32 %v1556_v59, %v712_v31 }
 0x1cb   : > { %872 = vst [vmem:[%s1563_s21 + $0x8] sm:$0xff] %v718_v30 }
 0x1cc   : > { %871 = vst [vmem:[%s1563_s21] sm:$0xff] %v713_v32  ;;  %v1175_v33 = vpop.f32.mrb[34].mxu0 }
 0x1cd   : > { %v728_v34 = vadd.f32 %v1175_v33, %v1556_v59  ;;  %v722_v35 = vpop.f32.mrb[35].mxu0 }
 0x1ce   : > { %v723_v36 = vadd.f32 %v1556_v59, %v722_v35 }
 0x1cf   : > { %874 = vst [vmem:[%s1563_s21 + $0x18] sm:$0xff] %v728_v34 }
 0x1d0   : > { %873 = vst [vmem:[%s1563_s21 + $0x10] sm:$0xff] %v723_v36  ;;  %v1178_v37 = vpop.f32.mrb[36].mxu0 }
 0x1d1   : > { %v738_v38 = vadd.f32 %v1178_v37, %v1556_v59  ;;  %v732_v39 = vpop.f32.mrb[37].mxu0 }
 0x1d2   : > { %v733_v40 = vadd.f32 %v1556_v59, %v732_v39 }
 0x1d3   : > { %876 = vst [vmem:[%s1563_s21 + $0x28] sm:$0xff] %v738_v38 }
 0x1d4   : > { %875 = vst [vmem:[%s1563_s21 + $0x20] sm:$0xff] %v733_v40  ;;  %v1181_v41 = vpop.f32.mrb[0].mxu1 }
 0x1d5   : > { %v748_v42 = vadd.f32 %v1181_v41, %v1556_v59  ;;  %v742_v43 = vpop.f32.mrb[1].mxu1 }
 0x1d6   : > { %v743_v44 = vadd.f32 %v1556_v59, %v742_v43 }
 0x1d7   : > { %878 = vst [vmem:[%s1563_s21 + $0x38] sm:$0xff] %v748_v42 }
 0x1d8   : > { %877 = vst [vmem:[%s1563_s21 + $0x30] sm:$0xff] %v743_v44  ;;  %v1184_v45 = vpop.f32.mrb[2].mxu1 }
 0x1d9   : > { %v758_v46 = vadd.f32 %v1184_v45, %v1556_v59  ;;  %v752_v47 = vpop.f32.mrb[3].mxu1 }
 0x1da   : > { %v753_v48 = vadd.f32 %v1556_v59, %v752_v47 }
 0x1db   : > { %880 = vst [vmem:[%s1563_s21 + $0x48] sm:$0xff] %v758_v46 }
 0x1dc   : > { %879 = vst [vmem:[%s1563_s21 + $0x40] sm:$0xff] %v753_v48  ;;  %v1187_v49 = vpop.f32.mrb[4].mxu1 }
 0x1dd   : > { %v768_v50 = vadd.f32 %v1187_v49, %v1556_v59  ;;  %v762_v51 = vpop.f32.mrb[5].mxu1 }
 0x1de   : > { %v763_v52 = vadd.f32 %v1556_v59, %v762_v51 }
 0x1df   : > { %882 = vst [vmem:[%s1563_s21 + $0x58] sm:$0xff] %v768_v50 }
 0x1e0   : > { %881 = vst [vmem:[%s1563_s21 + $0x50] sm:$0xff] %v763_v52  ;;  %v1190_v53 = vpop.f32.mrb[6].mxu1 }
 0x1e1   : > { %v778_v54 = vadd.f32 %v1190_v53, %v1556_v59  ;;  %v772_v55 = vpop.f32.mrb[7].mxu1 }
 0x1e2   : > { %v773_v56 = vadd.f32 %v1556_v59, %v772_v55 }
 0x1e3   : > { %884 = vst [vmem:[%s1563_s21 + $0x68] sm:$0xff] %v778_v54 }
 0x1e4   : > { %883 = vst [vmem:[%s1563_s21 + $0x60] sm:$0xff] %v773_v56  ;;  %v1193_v57 = vpop.f32.mrb[8].mxu1 }
 0x1e5   : > { %v788_v58 = vadd.f32 %v1193_v57, %v1556_v59  ;;  %v782_v60 = vpop.f32.mrb[9].mxu1 }
 0x1e6   : > { %v783_v61 = vadd.f32 %v1556_v59, %v782_v60 }
 0x1e7   : > { %886 = vst [vmem:[%s1563_s21 + $0x78] sm:$0xff] %v788_v58 }
 0x1e8   : > { %885 = vst [vmem:[%s1563_s21 + $0x70] sm:$0xff] %v783_v61  ;;  %v1196_v62 = vpop.f32.mrb[10].mxu1 }
 0x1e9   : > { %v798_v63 = vadd.f32 %v1196_v62, %v1556_v59  ;;  %v792_v0 = vpop.f32.mrb[11].mxu1 }
 0x1ea   : > { %v793_v1 = vadd.f32 %v1556_v59, %v792_v0 }
 0x1eb   : > { %888 = vst [vmem:[%s1563_s21 + $0x88] sm:$0xff] %v798_v63 }
 0x1ec   : > { %887 = vst [vmem:[%s1563_s21 + $0x80] sm:$0xff] %v793_v1  ;;  %v1199_v2 = vpop.f32.mrb[12].mxu1 }
 0x1ed   : > { %v808_v3 = vadd.f32 %v1199_v2, %v1556_v59  ;;  %v802_v4 = vpop.f32.mrb[13].mxu1 }
 0x1ee   : > { %v803_v5 = vadd.f32 %v1556_v59, %v802_v4 }
 0x1ef   : > { %890 = vst [vmem:[%s1563_s21 + $0x98] sm:$0xff] %v808_v3 }
 0x1f0   : > { %889 = vst [vmem:[%s1563_s21 + $0x90] sm:$0xff] %v803_v5  ;;  %v1202_v6 = vpop.f32.mrb[14].mxu1 }
 0x1f1   : > { %v818_v7 = vadd.f32 %v1202_v6, %v1556_v59  ;;  %v812_v8 = vpop.f32.mrb[15].mxu1 }
 0x1f2   : > { %v813_v9 = vadd.f32 %v1556_v59, %v812_v8 }
 0x1f3   : > { %892 = vst [vmem:[%s1563_s21 + $0xa8] sm:$0xff] %v818_v7 }
 0x1f4   : > { %891 = vst [vmem:[%s1563_s21 + $0xa0] sm:$0xff] %v813_v9  ;;  %v1205_v10 = vpop.f32.mrb[16].mxu1 }
 0x1f5   : > { %v828_v11 = vadd.f32 %v1205_v10, %v1556_v59  ;;  %v822_v12 = vpop.f32.mrb[17].mxu1 }
 0x1f6   : > { %v823_v13 = vadd.f32 %v1556_v59, %v822_v12 }
 0x1f7   : > { %894 = vst [vmem:[%s1563_s21 + $0xb8] sm:$0xff] %v828_v11 }
 0x1f8   : > { %893 = vst [vmem:[%s1563_s21 + $0xb0] sm:$0xff] %v823_v13  ;;  %v1208_v14 = vpop.f32.mrb[18].mxu1 }
 0x1f9   : > { %v838_v15 = vadd.f32 %v1208_v14, %v1556_v59  ;;  %v832_v16 = vpop.f32.mrb[19].mxu1 }
 0x1fa   : > { %v833_v17 = vadd.f32 %v1556_v59, %v832_v16 }
 0x1fb   : > { %896 = vst [vmem:[%s1563_s21 + $0xc8] sm:$0xff] %v838_v15 }
 0x1fc   : > { %895 = vst [vmem:[%s1563_s21 + $0xc0] sm:$0xff] %v833_v17  ;;  %v1211_v18 = vpop.f32.mrb[20].mxu1 }
 0x1fd   : > { %v848_v19 = vadd.f32 %v1211_v18, %v1556_v59  ;;  %v842_v20 = vpop.f32.mrb[21].mxu1 }
 0x1fe   : > { %v843_v21 = vadd.f32 %v1556_v59, %v842_v20 }
 0x1ff   : > { %898 = vst [vmem:[%s1563_s21 + $0xd8] sm:$0xff] %v848_v19 }
 0x200   : > { %897 = vst [vmem:[%s1563_s21 + $0xd0] sm:$0xff] %v843_v21  ;;  %v1214_v22 = vpop.f32.mrb[22].mxu1 }
 0x201   : > { %v858_v23 = vadd.f32 %v1214_v22, %v1556_v59  ;;  %v852_v24 = vpop.f32.mrb[23].mxu1 }
 0x202   : > { %v853_v25 = vadd.f32 %v1556_v59, %v852_v24 }
 0x203   : > { %900 = vst [vmem:[%s1563_s21 + $0xe8] sm:$0xff] %v858_v23 }
 0x204   : > { %899 = vst [vmem:[%s1563_s21 + $0xe0] sm:$0xff] %v853_v25  ;;  %v1217_v26 = vpop.f32.mrb[24].mxu1 }
 0x205   : > { %v868_v27 = vadd.f32 %v1217_v26, %v1556_v59  ;;  %v862_v28 = vpop.f32.mrb[25].mxu1 }
 0x206   : > { %v863_v29 = vadd.f32 %v1556_v59, %v862_v28 }
 0x207   : > { %902 = vst [vmem:[%s1563_s21 + $0xf8] sm:$0xff] %v868_v27 }
 0x208   : > { %901 = vst [vmem:[%s1563_s21 + $0xf0] sm:$0xff] %v863_v29 }
 0x209 PF: > { %s15_s18 = sadd.s32 1, %s1348_s18  }
 0x20a   : > { %p12_p4 = scmp.ge.s32.totalorder %s15_s18, 4  }
 0x20c   :  { %14 = sbr.rel (!%p12_p4) target bundleno = 1 (0x1), region = 70 }

</bundles_post_ra>
